<compile_context>
chip_gen: v5e
topology: v5e:2x2
jax: 0.10.0
libtpu: 0.0.40
codegen_flags: <defaults>
</compile_context>

<pallas_src>
import functools
import math

import jax
import jax.numpy as jnp
from jax.experimental import pallas as pl
from jax.experimental.pallas import tpu as pltpu

# PyTorch nn.Softplus defaults: beta=1, threshold=20
_SOFTPLUS_THRESHOLD = 20.0
_LOG2 = math.log(2.0)
_LANE = 128
_TINY_INPUT_ELEMS = 16 * 1024


def _shifted_softplus_kernel(x_ref, o_ref, *, shift, compute_dtype):
    """Elementwise: softplus(x) - shift, matching torch.nn.Softplus semantics."""
    x = x_ref[...].astype(compute_dtype)
    thr = jnp.asarray(_SOFTPLUS_THRESHOLD, compute_dtype)
    # x > threshold -> x ; else -> log1p(exp(x)).  exp overflow in masked-off
    # lanes is discarded by the select, so no extra clamp is needed.
    sp = jnp.where(x > thr, x, jnp.log1p(jnp.exp(x)))
    o_ref[...] = (sp - jnp.asarray(shift, compute_dtype)).astype(o_ref.dtype)


def _reference(x, shift):
    """Plain-JAX reference / tiny-input fast path (same Softplus semantics)."""
    xf = x.astype(jnp.float32)
    sp = jnp.where(xf > _SOFTPLUS_THRESHOLD, xf,
                   jnp.log1p(jnp.exp(jnp.minimum(xf, _SOFTPLUS_THRESHOLD))))
    return (sp - shift).astype(x.dtype)


def shifted_softplus(x, shift=_LOG2, *, min_pallas_elements=_TINY_INPUT_ELEMS,
                     block_bytes=None):
    """x: any-shape float array (NCHW in the demo). shift: Python float (log 2)."""
    orig_shape = x.shape
    orig_dtype = x.dtype
    n = x.size

    # Tiny-input fast path: launch + pipeline overhead dwarfs the work and XLA
    # fuses the elementwise expression anyway.
    if n == 0 or n < min_pallas_elements:
        return _reference(x, shift)

    try:
        kind = jax.devices()[0].device_kind.lower()
    except Exception:  # pragma: no cover - be robust to odd runtimes
        kind = ""

    # Generation-aware per-pipeline-buffer size target (HBM roofline driven).
    if block_bytes is None:
        if "v7" in kind:
            block_bytes = 8 << 20
        elif "v6" in kind:
            block_bytes = 4 << 20
        elif "v5" in kind:
            block_bytes = 2 << 20
        else:
            block_bytes = 4 << 20

    # bf16 VPU/EUP are native on v6e/v7x; elsewhere (v5e / unknown / f32 input)
    # compute in f32.
    if orig_dtype == jnp.bfloat16 and ("v6" in kind or "v7" in kind):
        compute_dtype = jnp.bfloat16
    else:
        compute_dtype = jnp.float32

    itemsize = jnp.dtype(orig_dtype).itemsize
    sub = max(8, 32 // itemsize)  # sublane alignment: f32 -> 8, bf16 -> 16, 1B -> 32

    # Pad the flat stream only to the 128-lane boundary (<= 127 elements).
    pad = (-n) % _LANE
    flat = x.reshape(-1)
    if pad:
        flat = jnp.pad(flat, (0, pad))
    rows = (n + pad) // _LANE
    x2d = flat.reshape(rows, _LANE)

    target_rows = max(sub, (block_bytes // (_LANE * itemsize)) // sub * sub)
    if rows <= target_rows:
        block_rows = rows            # one block == full array dim (always legal)
    else:
        block_rows = target_rows     # multiple of `sub`; last block may be partial
    num_blocks = pl.cdiv(rows, block_rows)

    tile_bytes = block_rows * _LANE * itemsize
    # 2 in + 2 out double-buffers plus slack; cap at 48 MiB (v7x has 64 MiB/TC).
    vmem_limit = int(min(48 << 20, max(16 << 20, 6 * tile_bytes)))

    out2d = pl.pallas_call(
        functools.partial(_shifted_softplus_kernel, shift=float(shift),
                          compute_dtype=compute_dtype),
        out_shape=jax.ShapeDtypeStruct((rows, _LANE), orig_dtype),
        grid_spec=pltpu.PrefetchScalarGridSpec(
            num_scalar_prefetch=0,
            grid=(num_blocks,),
            in_specs=[pl.BlockSpec((block_rows, _LANE), lambda i: (i, 0))],
            out_specs=pl.BlockSpec((block_rows, _LANE), lambda i: (i, 0)),
        ),
        compiler_params=pltpu.CompilerParams(
            dimension_semantics=("parallel",),
            vmem_limit_bytes=vmem_limit,
        ),
    )(x2d)

    out_flat = out2d.reshape(-1)
    if pad:                          # only pay slice cost when lane-unaligned
        out_flat = out_flat[:n]
    return out_flat.reshape(orig_shape)


if __name__ == "__main__":
    key = jax.random.PRNGKey(0)
    # NCHW input, small shapes: batch=2, channels=4, spatial=16x16
    x = jax.random.normal(key, (2, 4, 16, 16), dtype=jnp.float32) * 5.0
    ref = _reference(x, _LOG2)

    # 1) Default path for the demo shape (tiny-input fast path).
    y = jax.block_until_ready(shifted_softplus(x))
    assert y.shape == x.shape and y.dtype == x.dtype
    assert jnp.allclose(y, ref, atol=1e-5, rtol=1e-5)

    # 2) Same demo shape forced through the Pallas kernel (single block).
    y_k = jax.block_until_ready(shifted_softplus(x, min_pallas_elements=0))
    assert y_k.shape == x.shape and y_k.dtype == x.dtype
    assert jnp.allclose(y_k, ref, atol=1e-5, rtol=1e-5)

    # 3) Larger, lane-unaligned input through the kernel with small blocks to
    #    exercise multi-block + masked partial last block + <=127-elem pad.
    x_big = jax.random.normal(jax.random.PRNGKey(1), (3, 7, 129, 131),
                              dtype=jnp.float32) * 5.0
    ref_big = _reference(x_big, _LOG2)
    y_big = jax.block_until_ready(
        shifted_softplus(x_big, min_pallas_elements=0, block_bytes=64 * 1024))
    assert jnp.allclose(y_big, ref_big, atol=1e-5, rtol=1e-5)

    # 4) Same input with the generation-tuned default block size.
    y_big2 = jax.block_until_ready(shifted_softplus(x_big, min_pallas_elements=0))
    assert jnp.allclose(y_big2, ref_big, atol=1e-5, rtol=1e-5)

    print("KERNEL_OK")
</pallas_src>

<mosaic_0001>
module attributes {stable_mosaic.version = 11 : i64} {
  func.func @_shifted_softplus_kernel(%arg0: i32, %arg1: memref<16x128xf32, #tpu.memory_space<vmem>>, %arg2: memref<16x128xf32, #tpu.memory_space<vmem>>) attributes {dimension_semantics = [#tpu.dimension_semantics<parallel>], iteration_bounds = array<i64: 1>, scalar_prefetch = 0 : i64, scratch_operands = 0 : i64, tpu.core_type = #tpu.core_type<tc>, window_params = [{transform_indices = @transform_0, window_bounds = array<i64: 16, 128>}, {transform_indices = @transform_1, window_bounds = array<i64: 16, 128>}]} {
    %c0 = arith.constant 0 : index
    %c0_0 = arith.constant 0 : index
    %0 = vector.load %arg1[%c0, %c0_0] : memref<16x128xf32, #tpu.memory_space<vmem>>, vector<16x128xf32>
    %cst = arith.constant 2.000000e+01 : f32
    %1 = vector.broadcast %cst : f32 to vector<16x128xf32>
    %2 = arith.cmpf ogt, %0, %1 : vector<16x128xf32>
    %3 = math.exp %0 : vector<16x128xf32>
    %4 = math.log1p %3 : vector<16x128xf32>
    %5 = arith.select %2, %0, %4 : vector<16x128xi1>, vector<16x128xf32>
    %cst_1 = arith.constant 0.693147182 : f32
    %6 = vector.broadcast %cst_1 : f32 to vector<16x128xf32>
    %7 = arith.subf %5, %6 : vector<16x128xf32>
    %c0_2 = arith.constant 0 : index
    %c0_3 = arith.constant 0 : index
    %8 = vector.load %arg2[%c0_2, %c0_3] : memref<16x128xf32, #tpu.memory_space<vmem>>, vector<16x128xf32>
    tpu.vector_store %arg2[%c0_2, %c0_3], %7 {strides = array<i32>} : memref<16x128xf32, #tpu.memory_space<vmem>>, vector<16x128xf32>,
    return
  }
  func.func @transform_0(%arg0: i32) -> (i32, i32) {
    %c0_i32 = arith.constant 0 : i32
    %c0_i32_0 = arith.constant 0 : i32
    return %arg0, %c0_i32 : i32, i32
  }
  func.func @transform_1(%arg0: i32) -> (i32, i32) {
    %c0_i32 = arith.constant 0 : i32
    %c0_i32_0 = arith.constant 0 : i32
    return %arg0, %c0_i32 : i32, i32
  }
}

</mosaic_0001>

<bundles_post_ra>
// kernel: tpu_custom_call.1
= control target key start
LH: loop header
LB: loop body
LE: loop exit
PB: predicated region body
PF: predicated region fallthrough
CT: control target
= control target key end

     0   :  { %6 = vsyncpa [#allocation3], 0  ;;  %s168_s0 = inlined_call_operand.hbm [shape: f32[16,128], index: 0, kind: input, shape index: {}]   ;;  %s169_s1 = inlined_call_operand.hbm [shape: f32[16,128], index: 1, kind: output, shape index: {}]  }
   0x1   :  { %7 = vsyncpa [#allocation4], 0  ;;  %s12_s8 = sshll.u32 %s168_s0, 4  ;;  %s142_s9 = smov [#allocation2]   ;;  %s13_s8 = int_to_ptr.hbm [resolvable:$true] %s12_s8 }
   0x2   :  { %s14_s10 = sshll.u32 %s142_s9, 4  ;;  %s143_s11 = smov 128   ;;  %s15_s10 = int_to_ptr.vmem [resolvable:$true] %s14_s10 }
   0x3   :  { %s144_s12 = smov 8  }
   0x4   :  { %20 = dma.hbm_to_vmem [thread:$0]  %s13_s8, 256, %s15_s10, [#allocation3], %s143_s11, %s143_s11, %s144_s12  }
   0x5   :  { %138 = dma.done.wait [#allocation3], 256  }
   0x6   :  { %139 = vsyncadd [#allocation3], 4294967040  ;;  %v25_v0 = vld [vmem:[#allocation2] sm:$0xff]  ;;  %v26_v1 = vld [vmem:[#allocation2 + $0x8] sm:$0xff]  ;;  %s145_s0 = smov [#allocation5]   ;;  %s63_s16 = sshll.u32 %s169_s1, 4  ;;  %s64_s16 = int_to_ptr.hbm [resolvable:$true] %s63_s16 }
   0x7   :  { %v29_v2 = vmul.f32 1.442695, %v25_v0  ;;  %v31_v3 = vmul.f32 1.442695, %v26_v1  ;;  %vm27_vm1 = vcmp.gt.f32.partialorder %v25_v0, 20.0  ;;  %vm28_vm3 = vcmp.gt.f32.partialorder %v26_v1, 20.0 }
   0x8   :  { %s61_s13 = sshll.u32 %s145_s0, 4  ;;  %s62_s13 = int_to_ptr.vmem [resolvable:$true] %s61_s13 }
   0x9   :  { %82 = vpow2.f32 %v29_v2 }
   0xa   :  { %84 = vpow2.f32 %v31_v3 }
   0xf   :  { %v83_v4 = vpop.eup %82 }
  0x10   :  { %v85_v5 = vpop.eup %84  ;;  %v33_v6 = vadd.f32 1.0, %v83_v4  ;;  %v36_v7 = vmul.f32 -0.5, %v83_v4  ;;  %v39_v11 = vand.u32 2147483647, %v83_v4 }
  0x11   :  { %v42_v8 = vadd.f32 1.0, %v85_v5  ;;  %v45_v9 = vmul.f32 -0.5, %v85_v5  ;;  %v48_v13 = vand.u32 2147483647, %v85_v5 }
  0x12   :  { %86 = vlog2.f32 %v33_v6  ;;  %v37_v10 = vadd.f32 1.0, %v36_v7  ;;  %vm40_vm0 = vcmp.lt.f32.partialorder %v39_v11, 0.0004427343 }
  0x13   :  { %88 = vlog2.f32 %v42_v8  ;;  %v46_v12 = vadd.f32 1.0, %v45_v9  ;;  %vm49_vm2 = vcmp.lt.f32.partialorder %v48_v13, 0.0004427343 }
  0x14   :  { %v38_v14 = vmul.f32 %v83_v4, %v37_v10 }
  0x15   :  { %v47_v16 = vmul.f32 %v85_v5, %v46_v12 }
  0x18   :  { %v87_v15 = vpop.eup %86 }
  0x19   :  { %v89_v17 = vpop.eup %88  ;;  %v35_v18 = vmul.f32 0.6931472, %v87_v15 }
  0x1a   :  { %v44_v19 = vmul.f32 0.6931472, %v89_v17 }
  0x1b   :  { %v41_v20 = vsel %vm40_vm0, %v38_v14, %v35_v18 }
  0x1c   :  { %v51_v21 = vsel %vm27_vm1, %v25_v0, %v41_v20  ;;  %v50_v22 = vsel %vm49_vm2, %v47_v16, %v44_v19 }
  0x1d   :  { %v76_v23 = vadd.f32 -0.6931472, %v51_v21  ;;  %v52_v24 = vsel %vm28_vm3, %v26_v1, %v50_v22 }
  0x1e   :  { %v77_v25 = vadd.f32 -0.6931472, %v52_v24 }
  0x1f   :  { %55 = vst [vmem:[#allocation5] sm:$0xff] %v76_v23 }
  0x20   :  { %56 = vst [vmem:[#allocation5 + $0x8] sm:$0xff] %v77_v25 }
  0x21   :  { %69 = dma.vmem_to_hbm [thread:$0]  %s62_s13, 256, %s64_s16, [#allocation4], %s143_s11, %s143_s11, %s144_s12  }
  0x22   :  { %140 = dma.done.wait [#allocation4], 256  }
  0x23   :  { %141 = vsyncadd [#allocation4], 4294967040 }
  0x24   :  { %74 = vsyncpa [#allocation3], 1 }
  0x25   :  { %75 = vsyncpa [#allocation4], 1 }

</bundles_post_ra>
